<compile_context>
chip_gen: v6e
topology: v6e:2x2x1
jax: 0.10.0
libtpu: 0.0.40
codegen_flags: <defaults>
</compile_context>

<pallas_src>
import functools

import jax
import jax.numpy as jnp
import numpy as np
from jax.experimental import pallas as pl
from jax.experimental.pallas import tpu as pltpu


def _round_up(v, m):
    return (v + m - 1) // m * m


def _ldam_kernel(x_ref, tgt_ref, m_ref, nll_ref, *, s, n_rows):
    # x_ref:   [T, C] logits tile (native dtype; cast to f32 here)
    # tgt_ref: [T, 1] i32 targets
    # m_ref:   [1, C] f32 per-class margins (resident)
    # nll_ref: [T, 1] f32 per-row NLL (0 for rows past the true batch size)
    x = x_ref[...].astype(jnp.float32)
    tgt = tgt_ref[...]                                      # [T, 1]
    m = m_ref[...]                                          # [1, C]
    t, c = x.shape

    cls = jax.lax.broadcasted_iota(jnp.int32, (1, c), 1)    # [1, C]
    onehot = cls == tgt                                     # [T, C] bool

    # Margin subtraction on the target class only, then scale by s.
    # (s * m_t) * onehot == s * (onehot * m), so no cross-lane gather needed.
    z = (x - jnp.where(onehot, m, 0.0)) * s                 # [T, C] f32

    # Row-wise log-sum-exp and target logit (3 cross-lane reductions total).
    z_max = jnp.max(z, axis=1, keepdims=True)
    se = jnp.sum(jnp.exp(z - z_max), axis=1, keepdims=True)
    lse = z_max + jnp.log(se)
    z_t = jnp.sum(jnp.where(onehot, z, 0.0), axis=1, keepdims=True)

    # Mask rows past the true batch size (ragged last tile of the grid).
    row = jax.lax.broadcasted_iota(jnp.int32, (t, 1), 0) + pl.program_id(0) * t
    valid = row < n_rows
    nll_ref[...] = jnp.where(valid, lse - z_t, 0.0)


def ldam_loss(x, target, m_list, weight=None, s=30.0, tile_n=None):
    """Pallas-TPU LDAM loss.

    x: [N, C] logits (f32 or bf16; bf16 halves input HBM traffic and the
       kernel accumulates in f32 internally), target: [N] int class ids,
       m_list: [C] per-class margins, weight: optional [C] CE weights.
    Returns sum_i w[t_i] * nll_i / sum_i w[t_i]  (F.cross_entropy 'mean').
    """
    n, c = x.shape
    tgt2d = target.astype(jnp.int32).reshape(n, 1)
    m2d = m_list.astype(jnp.float32).reshape(1, c)

    # ---- tile-size selection ------------------------------------------------
    c_lanes = _round_up(max(c, 128), 128)          # lane-padded width (VMEM est.)
    auto_rows = max(8, ((2 << 20) // (c_lanes * 4)) // 8 * 8)   # ~2 MiB f32 tile
    cap_rows = max(8, ((4 << 20) // (c_lanes * 4)) // 8 * 8)    # hard 4 MiB cap
    want = auto_rows if tile_n is None else int(tile_n)
    want = max(8, min(want, cap_rows, 2048))
    # v7x (2 TCs): prefer >= 2 grid steps when each half-tile stays >= ~1 MiB;
    # no effect on v5e/v6e (single TensorCore).
    half_rows = _round_up(-(-n // 2), 8)
    if half_rows * c_lanes * 4 >= (1 << 20):
        want = min(want, half_rows)
    if want >= n:
        tile_n = n                       # single block; full-extent dim allowed
    else:
        tile_n = _round_up(want, 8)      # ragged last tile masked in-kernel
        if tile_n >= n:
            tile_n = n
    grid = (pl.cdiv(n, tile_n),)

    # ---- scoped VMEM budget ---------------------------------------------------
    # Live set: double-buffered logits tile + a few [T, C] f32 temporaries +
    # resident margins + small target/output tiles; clamp to 32 MiB so the
    # request stays comfortable on v7x's 64 MiB physical VMEM.
    x_tile = 2 * tile_n * c_lanes * x.dtype.itemsize
    f32_tmps = 6 * tile_n * c_lanes * 4
    small = 4 * tile_n * 4 + c_lanes * 4
    vmem_limit = int(min(32 << 20, max(16 << 20, x_tile + f32_tmps + small)))

    # TODO(synk): for very large class counts (C so big that even tile_n=8 does
    # not fit the VMEM budget) switch to an online/streaming LSE over a C grid
    # axis instead of holding full rows in VMEM.

    kernel = functools.partial(_ldam_kernel, s=float(s), n_rows=n)
    nll = pl.pallas_call(
        kernel,
        out_shape=jax.ShapeDtypeStruct((n, 1), jnp.float32),
        grid_spec=pltpu.PrefetchScalarGridSpec(
            num_scalar_prefetch=0,
            grid=grid,
            in_specs=[
                pl.BlockSpec((tile_n, c), lambda i: (i, 0)),   # logits tile
                pl.BlockSpec((tile_n, 1), lambda i: (i, 0)),   # targets tile
                pl.BlockSpec((1, c), lambda i: (0, 0)),        # margins (resident)
            ],
            out_specs=pl.BlockSpec((tile_n, 1), lambda i: (i, 0)),
        ),
        compiler_params=pltpu.CompilerParams(
            dimension_semantics=("parallel",),
            vmem_limit_bytes=vmem_limit,
        ),
    )(x, tgt2d, m2d)

    # Per-sample CE-weight gather + final weighted mean in plain JAX (O(N)).
    if weight is None:
        w_i = jnp.ones((n,), dtype=jnp.float32)
    else:
        w_i = weight.astype(jnp.float32)[target]
    # NOTE: if all selected weights are zero this is 0/0 = NaN, matching
    # PyTorch's weighted-mean cross_entropy behaviour.
    return jnp.sum(w_i * nll[:, 0]) / jnp.sum(w_i)


def ldam_loss_ref(x, target, m_list, weight, s=30.0):
    # Pure-JAX reference of the PyTorch forward (for verification).
    n, c = x.shape
    x = x.astype(jnp.float32)
    onehot = jax.nn.one_hot(target, c, dtype=jnp.float32)
    batch_m = onehot @ m_list.reshape(c, 1)              # [N, 1]
    x_m = x - batch_m
    output = jnp.where(onehot > 0, x_m, x)
    z = s * output
    logp = jax.nn.log_softmax(z, axis=1)
    nll = -jnp.sum(logp * onehot, axis=1)
    w_i = weight[target]
    return jnp.sum(w_i * nll) / jnp.sum(w_i)


if __name__ == "__main__":
    # Deterministic parameter setup (as in LDAMLoss.__init__).
    cls_num_list = np.array([100, 200, 50, 400, 30, 80, 150, 60], dtype=np.float64)
    max_m = 0.5
    s = 30.0
    m_list_np = 1.0 / np.sqrt(np.sqrt(cls_num_list))
    m_list_np = m_list_np * (max_m / np.max(m_list_np))
    m_list = jnp.asarray(m_list_np, dtype=jnp.float32)

    num_classes = cls_num_list.shape[0]
    batch = 37  # not a multiple of the tile -> exercises the ragged last tile

    weight = jnp.linspace(0.5, 1.5, num_classes, dtype=jnp.float32)

    key = jax.random.PRNGKey(0)
    kx, kt = jax.random.split(key)
    x = jax.random.normal(kx, (batch, num_classes), dtype=jnp.float32)
    target = jax.random.randint(kt, (batch,), 0, num_classes, dtype=jnp.int32)

    loss_ref = jax.block_until_ready(ldam_loss_ref(x, target, m_list, weight, s=s))

    # Multi-tile path (tile_n=16 -> grid of 3, ragged last tile masked).
    loss_tiled = jax.block_until_ready(
        ldam_loss(x, target, m_list, weight, s=s, tile_n=16))
    assert np.allclose(np.asarray(loss_tiled), np.asarray(loss_ref),
                       rtol=1e-4, atol=1e-5), (loss_tiled, loss_ref)

    # Default (auto single-tile) path.
    loss_def = jax.block_until_ready(ldam_loss(x, target, m_list, weight, s=s))
    assert np.allclose(np.asarray(loss_def), np.asarray(loss_ref),
                       rtol=1e-4, atol=1e-5), (loss_def, loss_ref)

    # weight=None (uniform) path.
    ones_w = jnp.ones((num_classes,), dtype=jnp.float32)
    loss_nw = jax.block_until_ready(ldam_loss(x, target, m_list, None, s=s))
    loss_nw_ref = jax.block_until_ready(ldam_loss_ref(x, target, m_list, ones_w, s=s))
    assert np.allclose(np.asarray(loss_nw), np.asarray(loss_nw_ref),
                       rtol=1e-4, atol=1e-5), (loss_nw, loss_nw_ref)

    # bf16 logits accepted natively (cast to f32 inside the kernel).
    xb = x.astype(jnp.bfloat16)
    loss_bf16 = jax.block_until_ready(
        ldam_loss(xb, target, m_list, weight, s=s, tile_n=16))
    loss_bf16_ref = jax.block_until_ready(
        ldam_loss_ref(xb.astype(jnp.float32), target, m_list, weight, s=s))
    assert np.allclose(np.asarray(loss_bf16), np.asarray(loss_bf16_ref),
                       rtol=1e-2, atol=1e-2), (loss_bf16, loss_bf16_ref)

    print("KERNEL_OK")
</pallas_src>

<mosaic_0001>
module attributes {stable_mosaic.version = 11 : i64} {
  func.func @_ldam_kernel(%arg0: i32, %arg1: memref<16x8xf32, #tpu.memory_space<vmem>>, %arg2: memref<16x1xi32, #tpu.memory_space<vmem>>, %arg3: memref<1x8xf32, #tpu.memory_space<vmem>>, %arg4: memref<16x1xf32, #tpu.memory_space<vmem>>) attributes {dimension_semantics = [#tpu.dimension_semantics<parallel>], iteration_bounds = array<i64: 3>, scalar_prefetch = 0 : i64, scratch_operands = 0 : i64, tpu.core_type = #tpu.core_type<tc>, window_params = [{transform_indices = @transform_0, window_bounds = array<i64: 16, 8>}, {transform_indices = @transform_1, window_bounds = array<i64: 16, 1>}, {pipeline_mode = #tpu.pipeline_mode<synchronous>, transform_indices = @transform_2, window_bounds = array<i64: 1, 8>}, {transform_indices = @transform_3, window_bounds = array<i64: 16, 1>}]} {
    %c0 = arith.constant 0 : index
    %c0_0 = arith.constant 0 : index
    %0 = vector.load %arg1[%c0, %c0_0] : memref<16x8xf32, #tpu.memory_space<vmem>>, vector<16x8xf32>
    %c0_1 = arith.constant 0 : index
    %c0_2 = arith.constant 0 : index
    %1 = vector.load %arg2[%c0_1, %c0_2] : memref<16x1xi32, #tpu.memory_space<vmem>>, vector<16x1xi32>
    %c0_3 = arith.constant 0 : index
    %c0_4 = arith.constant 0 : index
    %2 = vector.load %arg3[%c0_3, %c0_4] : memref<1x8xf32, #tpu.memory_space<vmem>>, vector<1x8xf32>
    %3 = tpu.iota {dimensions = array<i32: 1>} : vector<1x8xi32>
    %4 = vector.broadcast %3 : vector<1x8xi32> to vector<16x8xi32>
    %5 = vector.broadcast %1 : vector<16x1xi32> to vector<16x8xi32>
    %6 = arith.cmpi eq, %4, %5 : vector<16x8xi32>
    %cst = arith.constant 0.000000e+00 : f32
    %7 = vector.shape_cast %2 : vector<1x8xf32> to vector<1x8xf32>
    %8 = vector.broadcast %7 : vector<1x8xf32> to vector<16x8xf32>
    %9 = vector.broadcast %cst : f32 to vector<16x8xf32>
    %10 = arith.select %6, %8, %9 : vector<16x8xi1>, vector<16x8xf32>
    %11 = arith.subf %0, %10 : vector<16x8xf32>
    %cst_5 = arith.constant 3.000000e+01 : f32
    %12 = vector.broadcast %cst_5 : f32 to vector<16x8xf32>
    %13 = arith.mulf %11, %12 : vector<16x8xf32>
    %cst_6 = arith.constant dense<0xFF800000> : vector<16xf32>
    %14 = vector.multi_reduction <maximumf>, %13, %cst_6 [1] : vector<16x8xf32> to vector<16xf32>
    %15 = vector.shape_cast %14 : vector<16xf32> to vector<16x1xf32>
    %16 = vector.broadcast %15 : vector<16x1xf32> to vector<16x8xf32>
    %17 = arith.subf %13, %16 : vector<16x8xf32>
    %18 = math.exp %17 : vector<16x8xf32>
    %cst_7 = arith.constant dense<0.000000e+00> : vector<16xf32>
    %19 = vector.multi_reduction <add>, %18, %cst_7 [1] : vector<16x8xf32> to vector<16xf32>
    %20 = vector.shape_cast %19 : vector<16xf32> to vector<16x1xf32>
    %21 = math.log %20 : vector<16x1xf32>
    %22 = arith.addf %15, %21 : vector<16x1xf32>
    %cst_8 = arith.constant 0.000000e+00 : f32
    %23 = vector.broadcast %cst_8 : f32 to vector<16x8xf32>
    %24 = arith.select %6, %13, %23 : vector<16x8xi1>, vector<16x8xf32>
    %cst_9 = arith.constant dense<0.000000e+00> : vector<16xf32>
    %25 = vector.multi_reduction <add>, %24, %cst_9 [1] : vector<16x8xf32> to vector<16xf32>
    %26 = vector.shape_cast %25 : vector<16xf32> to vector<16x1xf32>
    %27 = tpu.iota {dimensions = array<i32: 0>} : vector<16x1xi32>
    %c16_i32 = arith.constant 16 : i32
    %28 = arith.muli %arg0, %c16_i32 : i32
    %29 = vector.broadcast %28 : i32 to vector<16x1xi32>
    %30 = arith.addi %27, %29 : vector<16x1xi32>
    %c37_i32 = arith.constant 37 : i32
    %31 = vector.broadcast %c37_i32 : i32 to vector<16x1xi32>
    %32 = arith.cmpi slt, %30, %31 : vector<16x1xi32>
    %33 = arith.subf %22, %26 : vector<16x1xf32>
    %cst_10 = arith.constant 0.000000e+00 : f32
    %34 = vector.broadcast %cst_10 : f32 to vector<16x1xf32>
    %35 = arith.select %32, %33, %34 : vector<16x1xi1>, vector<16x1xf32>
    %c0_11 = arith.constant 0 : index
    %c0_12 = arith.constant 0 : index
    %36 = vector.load %arg4[%c0_11, %c0_12] : memref<16x1xf32, #tpu.memory_space<vmem>>, vector<16x1xf32>
    tpu.vector_store %arg4[%c0_11, %c0_12], %35 {strides = array<i32>} : memref<16x1xf32, #tpu.memory_space<vmem>>, vector<16x1xf32>,
    return
  }
  func.func @transform_0(%arg0: i32) -> (i32, i32) {
    %c0_i32 = arith.constant 0 : i32
    %c0_i32_0 = arith.constant 0 : i32
    return %arg0, %c0_i32 : i32, i32
  }
  func.func @transform_1(%arg0: i32) -> (i32, i32) {
    %c0_i32 = arith.constant 0 : i32
    %c0_i32_0 = arith.constant 0 : i32
    return %arg0, %c0_i32 : i32, i32
  }
  func.func @transform_2(%arg0: i32) -> (i32, i32) {
    %c0_i32 = arith.constant 0 : i32
    %c0_i32_0 = arith.constant 0 : i32
    %c0_i32_1 = arith.constant 0 : i32
    return %c0_i32, %c0_i32_0 : i32, i32
  }
  func.func @transform_3(%arg0: i32) -> (i32, i32) {
    %c0_i32 = arith.constant 0 : i32
    %c0_i32_0 = arith.constant 0 : i32
    return %arg0, %c0_i32 : i32, i32
  }
}

</mosaic_0001>

<bundles_post_ra>
// kernel: tpu_custom_call.1
= control target key start
LH: loop header
LB: loop body
LE: loop exit
PB: predicated region body
PF: predicated region fallthrough
CT: control target
= control target key end

     0   :  { %s780_s12 = smov 0   ;;  %s782_s13 = smov 0   ;;  %s879_s0 = inlined_call_operand.vmem [shape: f32[37,8], index: 0, kind: input, shape index: {}]   ;;  %s880_s1 = inlined_call_operand.vmem [shape: s32[37,1], index: 1, kind: input, shape index: {}]   ;;  %s881_s2 = inlined_call_operand.vmem [shape: f32[1,8], index: 2, kind: input, shape index: {}]   ;;  %s882_s3 = inlined_call_operand.vmem [shape: f32[37,1], index: 3, kind: output, shape index: {}]  }
   0x1   :  { %s784_s14 = smov 0  }
   0x2 LB: > { %s793_s15 = sadd.s32 4294967295, %s725_s14   ;;  %s795_s16 = sadd.s32 1, %s725_s14   ;;  %s725_s14 = sphi %s784_s14, %s886_s14   ;;  %s721_s13 = sphi %s782_s13, %s885_s13   ;;  %s717_s12 = sphi %s780_s12, %s884_s12  }
   0x3   : > { %s90_s17 = ssub.s32 %s725_s14, %s795_s16  ;;  %s93_s18 = sadd.s32 1, %s721_s13 }
   0x4   : > { %p91_p0 = scmp.eq.s32.totalorder %s90_s17, 0  ;;  %p103_p1 = scmp.ne.s32.totalorder %s721_s13, %s717_s12 }
   0x5   : > { %p104_p2 = scmp.eq.s32.totalorder %s793_s15, 2  ;;  %p545_p3 = scmp.ge.s32.totalorder %s725_s14, 1 }
   0x6   : > { %s803_s19 = scalar_select %p91_p0, %s721_s13, %s93_s18  }
   0x7   : > { %p805_p4 = por %p104_p2, %p103_p1  ;;  %p165_p5 = scmp.lt.s32.totalorder %s725_s14, 4 }
   0x9   : > { %p166_p6 = pnand %p545_p3, %p165_p5 }
   0xa   : > { %s810_s21 = sshll.u32 (!%p166_p6), %s793_s15, 1  ;;  %s552_s5 = sshll.u32 (!%p166_p6), %s793_s15, 4 }
   0xb   : > { %169 = sbr.rel (%p166_p6) target bundleno = 512 (0x200), region = 32  ;;  %p206_p7 = scmp.lt.s32.totalorder (!%p166_p6), %s810_s21, 4 }
   0xc   : > { %s198_s6 = sand.u32 (!%p166_p6), 1, %s717_s12  }
   0xd   : > { %s546_s7 = sshll.u32 (!%p166_p6), %s198_s6, 4 }
   0xe   : > { %s835_s8 = scalar_lea.vmem (!%p166_p6), [#allocation2], %s546_s7  }
  0x10   : > { %v759_v0 = vmov 0   ;;  %s207_s22 = scalar_select %p206_p7, %s810_s21, 4  ;;  %v239_v3 = vlaneseq  ;;  %v551_v5 = vld [vmem:[%s881_s2] ss:$0 sm:$0xff]  ;;  %vm261_vm1 = vcmask 64512   ;;  %v298_v35 = vstv %s552_s5 }
  0x11   : > { %662 = vset.pattern.permute.xlu0 %v759_v0  ;;  %vm307_vm4 = vcmask 7168   ;;  %s318_s9 = ssub.s32 (%p805_p4), 5, %s810_s21  ;;  %s845_s12 = scalar_lea.vmem (%p805_p4), %s882_s3, %s552_s5  }
  0x12   : > { %s548_s23 = sshll.u32 %s207_s22, 3  ;;  %v240_v4 = vand.u32 127, %v239_v3  ;;  %v295_v34 = vshrl.u32 %v239_v3, 7  ;;  %p319_p8 = scmp.lt.s32.totalorder (%p805_p4), %s318_s9, 2 }
  0x13   : > { %s223_s26 = scalar_lea.vmem %s880_s1, %s548_s23  ;;  %s209_s29 = scalar_lea.vmem %s879_s0, %s548_s23 }
  0x14   : > { %v236_v1 = vld [vmem:[%s223_s26] sm:$0xff]  ;;  %v237_v2 = vld [vmem:[%s223_s26 + $0x8] sm:$0xff]  ;;  %v299_v37 = vadd.s32 %v298_v35, %v295_v34  ;;  %v296_v38 = vadd.s32 8, %v295_v34 }
  0x15   : > { %242 = vperm.xlu0 %662, %v236_v1   ;;  %v234_v7 = vld [vmem:[%s209_s29] sm:$0xff]  ;;  %v235_v11 = vld [vmem:[%s209_s29 + $0x8] sm:$0xff] }
  0x16   : > { %vm301_vm3 = vcmp.lt.s32.totalorder %v299_v37, 37  ;;  %v300_v43 = vadd.s32 %v298_v35, %v296_v38 }
  0x18   : > { %vm302_vm5 = vcmp.lt.s32.totalorder %v300_v43, 37 }
  0x19   : > { %245 = vperm.xlu0 %662, %v237_v2  }
  0x90   : > { %v243_v6 = vpop.permute.xlu0 %242 }
  0x91   : > { %vm247_vm0 = vcmp.eq.s32.totalorder %v240_v4, %v243_v6 }
  0x92   : > { %v255_v8 = vsel %vm247_vm0, %v551_v5, 0.0 }
  0x93   : > { %v257_v9 = vsub.f32 %v234_v7, %v255_v8 }
  0x94   : > { %v246_v10 = vpop.permute.xlu0 %245 }
  0x95   : > { %v259_v12 = vmul.f32 30.0, %v257_v9  ;;  %vm248_vm2 = vcmp.eq.s32.totalorder %v240_v4, %v246_v10 }
  0x96   : > { %v256_v13 = vsel %vm248_vm2, %v551_v5, 0.0 }
  0x97   : > { %v258_v14 = vsub.f32 %v235_v11, %v256_v13  ;;  %v262_v15 = vsel %vm261_vm1, %v259_v12, -inf  ;;  %v286_v28 = vsel %vm247_vm0, %v259_v12, 0.0 }
  0x98   : > { %263 = vmax.xlane.f32.xlu1 %v262_v15  ;;  %v288_v29 = vsel %vm261_vm1, %v286_v28, 0.0 }
  0x99   : > { %v260_v16 = vmul.f32 30.0, %v258_v14 }
  0x9b   : > { %v265_v17 = vsel %vm261_vm1, %v260_v16, -inf  ;;  %v287_v30 = vsel %vm248_vm2, %v260_v16, 0.0 }
  0x9c   : > { %266 = vmax.xlane.f32.xlu1 %v265_v17  ;;  %v291_v31 = vsel %vm261_vm1, %v287_v30, 0.0 }
 0x121   : > { %v264_v18 = vpop.xlane.xlu1 %263 }
 0x122   : > { %v268_v19 = vsub.f32 %v259_v12, %v264_v18 }
 0x124   : > { %v270_v20 = vmul.f32 1.442695, %v268_v19 }
 0x125   : > { %v267_v21 = vpop.xlane.xlu1 %266 }
 0x126   : > { %663 = vpow2.f32 %v270_v20  ;;  %v269_v22 = vsub.f32 %v260_v16, %v267_v21 }
 0x128   : > { %v272_v23 = vmul.f32 1.442695, %v269_v22 }
 0x12a   : > { %665 = vpow2.f32 %v272_v23 }
 0x133   : > { %v664_v24 = vpop.eup %663 }
 0x134   : > { %v274_v25 = vsel %vm261_vm1, %v664_v24, 0.0 }
 0x135   : > { %275 = vadd.xlane.f32.xlu0 %v274_v25 }
 0x137   : > { %v666_v26 = vpop.eup %665 }
 0x138   : > { %v277_v27 = vsel %vm261_vm1, %v666_v26, 0.0 }
 0x139   : > { %278 = vadd.xlane.f32.xlu1 %v277_v27 }
 0x13d   : > { %289 = vadd.xlane.f32.xlu1 %v288_v29 }
 0x141   : > { %292 = vadd.xlane.f32.xlu1 %v291_v31 }
 0x1be   : > { %v276_v32 = vpop.xlane.xlu0 %275 }
 0x1bf   : > { %667 = vlog2.f32 %v276_v32 }
 0x1c2   : > { %v279_v33 = vpop.xlane.xlu1 %278 }
 0x1c3   : > { %669 = vlog2.f32 %v279_v33 }
 0x1c6   : > { %v290_v40 = vpop.xlane.xlu1 %289 }
 0x1ca   : > { %v293_v48 = vpop.xlane.xlu1 %292 }
 0x1cc   : > { %v668_v36 = vpop.eup %667 }
 0x1cd   : > { %v281_v39 = vmul.f32 0.6931472, %v668_v36 }
 0x1cf   : > { %v284_v41 = vadd.f32 %v281_v39, %v264_v18 }
 0x1d0   : > { %v670_v42 = vpop.eup %669 }
 0x1d1   : > { %v283_v44 = vmul.f32 0.6931472, %v670_v42  ;;  %v303_v45 = vsub.f32 %v284_v41, %v290_v40 }
 0x1d3   : > { %v305_v46 = vsel %vm301_vm3, %v303_v45, 0.0  ;;  %v285_v47 = vadd.f32 %v283_v44, %v267_v21 }
 0x1d4   : > { %308 = vst.msk [vmem:[%s835_s8] sm:$0xff] %vm307_vm4, %v305_v46  ;;  %316 = sbr.rel (!%p805_p4) target bundleno = 512 (0x200), region = 36 }
 0x1d5   : > { %v304_v49 = vsub.f32 %v285_v47, %v293_v48 }
 0x1d7   : > { %v306_v50 = vsel %vm302_vm5, %v304_v49, 0.0 }
 0x1d8   : > { %309 = vst.msk [vmem:[%s835_s8 + $0x8] sm:$0xff] %vm307_vm4, %v306_v50 }
 0x1d9   : > { %s888_s9 = smov (!%p319_p8, %s318_s9), 2 }
 0x1da   : > { %s555_s14 = sshll.u32 %s888_s9, 7 }
 0x1db   : > { %p558_p9 = scmp.eq.s32.totalorder %s555_s14, 0 }
 0x1dc   : > { %s851_s15 = sshrl.u32 (!%p558_p9), %s888_s9, 1 }
 0x1dd   : > { %327 = sbr.rel (%p558_p9) target bundleno = 512 (0x200), region = 40  ;;  %p559_p10 = scmp.le.s32.totalorder (!%p558_p9), %s851_s15, 0 }
 0x1e2   : > { %492 = sbr.rel (%p559_p10) target bundleno = 495 (0x1ef), region = 119  ;;  %s727_s17 = smov (!%p559_p10), %s845_s12  }
 0x1e3   : > { %s731_s18 = smov (!%p559_p10), %s835_s8   ;;  %s735_s20 = smov (!%p559_p10), 0  }
 0x1e4   : > { %s739_s21 = smov (!%p559_p10), 0  }
 0x1e7 LB: >> { %v392_v51 = vld [vmem:[%s733_s18] sm:$0xff]  ;;  %v394_v52 = vld [vmem:[%s733_s18 + $0x8] sm:$0xff]  ;;  %s396_s22 = sadd.s32 1, %s737_s20  ;;  %s386_s21 = sadd.s32 1, %s741_s21   ;;  %s741_s21 = sphi %s739_s21, %s386_s21   ;;  %s737_s20 = sphi %s735_s20, %s736_s20   ;;  %s733_s18 = sphi %s731_s18, %s401_s18   ;;  %s729_s17 = sphi %s727_s17, %s402_s17  }
 0x1e8   : >> { %393 = vst [vmem:[%s729_s17] sm:$0xff] %v392_v51  ;;  %395 = vst [vmem:[%s729_s17 + $0x8] sm:$0xff] %v394_v52  ;;  %p397_p11 = scmp.ge.s32.totalorder %s396_s22, %s851_s15  ;;  %p385_p12 = scmp.ge.s32.totalorder %s386_s21, %s851_s15 }
 0x1ea   : >> { %s890_s22 = smov (%p397_p11, %s396_s22), 0  ;;  %388 = sbr.rel (!%p385_p12) target bundleno = 487 (0x1e7), region = 125 }
 0x1eb   : >> { %s560_s23 = sshll.u32 %s890_s22, 4  ;;  %s736_s20 = smov %s890_s22  }
 0x1ec   : >> { %s401_s18 = scalar_lea.vmem %s835_s8, %s560_s23 [#allocation2]   ;;  %s402_s17 = scalar_lea.vmem %s845_s12, %s560_s23  }
 0x1ef PF: > { %s861_s24 = sand.u32 1, %s888_s9   ;;  %s571_s25 = sshll.u32 %s851_s15, 4 }
 0x1f0   : > { %s407_s26 = scalar_lea.vmem %s835_s8, %s571_s25 [#allocation2]   ;;  %s409_s27 = scalar_lea.vmem %s845_s12, %s571_s25  }
 0x1f1   : > { %p565_p13 = scmp.le.s32.totalorder %s861_s24, 0 }
 0x1f2   : > { %s743_s28 = smov (!%p565_p13), %s409_s27   ;;  %s747_s29 = smov (!%p565_p13), %s407_s26  }
 0x1f3   : > { %506 = sbr.rel (%p565_p13) target bundleno = 512 (0x200), region = 130  ;;  %s751_s30 = smov (!%p565_p13), 0  }
 0x1f4   : > { %s755_s4 = smov (!%p565_p13), 0  }
 0x1f8 LB: >> { %v419_v53 = vld [vmem:[%s749_s29] sm:$0xff]  ;;  %s421_s5 = sadd.s32 1, %s753_s30  ;;  %s413_s4 = sadd.s32 1, %s757_s4   ;;  %s757_s4 = sphi %s755_s4, %s413_s4   ;;  %s753_s30 = sphi %s751_s30, %s752_s30   ;;  %s749_s29 = sphi %s747_s29, %s426_s29   ;;  %s745_s28 = sphi %s743_s28, %s427_s28  }
 0x1f9   : >> { %420 = vst [vmem:[%s745_s28] sm:$0xff] %v419_v53  ;;  %p422_p0 = scmp.ge.s32.totalorder %s421_s5, %s861_s24  ;;  %p412_p1 = scmp.ge.s32.totalorder %s413_s4, %s861_s24 }
 0x1fb   : >> { %s892_s5 = smov (%p422_p0, %s421_s5), 0  ;;  %415 = sbr.rel (!%p412_p1) target bundleno = 504 (0x1f8), region = 136 }
 0x1fc   : >> { %s566_s6 = sshll.u32 %s892_s5, 3  ;;  %s752_s30 = smov %s892_s5  }
 0x1fd   : >> { %s426_s29 = scalar_lea.vmem %s407_s26, %s566_s6 [#allocation2]   ;;  %s427_s28 = scalar_lea.vmem %s409_s27, %s566_s6  }
 0x200 PF: > { %p10_p2 = scmp.ge.s32.totalorder %s795_s16, 5   ;;  %s884_s12 = smov %s721_s13 }
 0x201   : > { %s885_s13 = smov %s803_s19  ;;  %s886_s14 = smov %s795_s16 }
 0x202   :  { %12 = sbr.rel (!%p10_p2) target bundleno = 2 (0x2), region = 147 }

</bundles_post_ra>
